<compile_context>
chip_gen: v6e
topology: v6e:2x2x1
jax: 0.10.0
libtpu: 0.0.40
codegen_flags: <defaults>
</compile_context>

<pallas_src>
import jax
import jax.numpy as jnp
from jax.experimental import pallas as pl
from jax.experimental.pallas import tpu as pltpu

D_IN = 32
D_HID = 64
PACK = 4                   # rows of x packed per 128-lane row
D_IN_P = PACK * D_IN       # 128 (lane-dense input / output width)
D_HID_P = PACK * D_HID     # 256 (lane-dense hidden width per branch)


def _ffn_kernel(x_ref, w12_ref, b12_ref, w3_ref, b3_ref, o_ref):
    x = x_ref[...]                                                    # (tm, 128)
    # Fused, block-diagonal w1||w2 branch: one (tm,128)x(128,512) MXU matmul.
    h12 = jnp.dot(x, w12_ref[...], preferred_element_type=jnp.float32)
    h12 = h12 + b12_ref[...]                                          # (tm, 512)
    h1 = h12[:, :D_HID_P]                                             # (tm, 256)
    h2 = h12[:, D_HID_P:]                                             # (tm, 256)
    # SiLU(h1) * h2 in f32 (VPU/EUP; row-block-local, safe with block-diag packing).
    gated = (h1 * jax.nn.sigmoid(h1)) * h2                            # (tm, 256)
    # Block-diagonal w3 projection: (tm,256)x(256,128), f32 accumulate.
    out = jnp.dot(gated, w3_ref[...], preferred_element_type=jnp.float32)
    out = out + b3_ref[...]                                           # (tm, 128)
    o_ref[...] = out.astype(o_ref.dtype)


def _round_up(n, m):
    return ((n + m - 1) // m) * m


def _pack_weights(w1, b1, w2, b2, w3, b3):
    """Block-diagonalize nn.Linear weights for 4-rows-per-vreg-row packing."""
    eye = jnp.eye(PACK, dtype=w1.dtype)
    w1bd = jnp.kron(eye, w1.T)                                        # (128, 256)
    w2bd = jnp.kron(eye, w2.T)                                        # (128, 256)
    w12 = jnp.concatenate([w1bd, w2bd], axis=1)                       # (128, 512)
    b12 = jnp.concatenate([jnp.tile(b1, PACK),
                           jnp.tile(b2, PACK)]).reshape(1, -1)        # (1, 512)
    w3bd = jnp.kron(eye, w3.T)                                        # (256, 128)
    b3bd = jnp.tile(b3, PACK).reshape(1, -1)                          # (1, 128)
    return w12, b12, w3bd, b3bd


def feed_forward(x, w1, b1, w2, b2, w3, b3, *, tm=None):
    """x: (B, 32); w*: nn.Linear-style (out, in) weights; b*: (out,) biases.

    tm: packed-row tile (multiple of 8).  Each packed row holds 4 logical
    rows of x, so tm=8192 corresponds to a 4 MiB f32 input tile.
    """
    B, d_in = x.shape
    assert d_in == D_IN
    out_dtype = x.dtype

    w12, b12, w3bd, b3bd = _pack_weights(w1, b1, w2, b2, w3, b3)

    # Pack 4 logical rows per 128-lane row (free reshape for row-major data;
    # pad B up to a multiple of 4 first if needed).
    b_pad = _round_up(B, PACK)
    if b_pad != B:
        x = jnp.pad(x, ((0, b_pad - B), (0, 0)))
    bp = b_pad // PACK
    xp = x.reshape(bp, D_IN_P)                                        # (Bp, 128)

    # Tile selection: big tiles (multi-MiB per step) to amortize grid-step
    # overhead, multiple of 8, and >= 2 grid steps when the batch allows it
    # so v7x's two TensorCores both get work via dimension_semantics.
    if tm is None:
        tm = 8192                              # 4 MiB f32 per (tm, 128) buffer
    rows_ceil = _round_up(bp, 8)
    tm = min(tm, rows_ceil)
    if tm >= rows_ceil and rows_ceil >= 16:    # single-step grid avoidable -> split
        tm = _round_up((rows_ceil + 1) // 2, 8)
    tm = max(8, (tm // 8) * 8)

    grid = (pl.cdiv(bp, tm),)
    out_p = pl.pallas_call(
        _ffn_kernel,
        out_shape=jax.ShapeDtypeStruct((bp, D_IN_P), out_dtype),
        grid_spec=pltpu.PrefetchScalarGridSpec(
            num_scalar_prefetch=0,
            grid=grid,
            in_specs=[
                pl.BlockSpec((tm, D_IN_P), lambda i: (i, 0)),          # packed x
                # Weights/biases: constant index_map -> fetched once, not
                # re-DMA'd per grid step (grid-invariant blocks).
                pl.BlockSpec((D_IN_P, 2 * D_HID_P), lambda i: (0, 0)),  # [w1bd | w2bd]
                pl.BlockSpec((1, 2 * D_HID_P), lambda i: (0, 0)),       # [b1 | b2] tiled
                pl.BlockSpec((D_HID_P, D_IN_P), lambda i: (0, 0)),      # w3bd
                pl.BlockSpec((1, D_IN_P), lambda i: (0, 0)),            # b3 tiled
            ],
            out_specs=pl.BlockSpec((tm, D_IN_P), lambda i: (i, 0)),     # packed out
        ),
        compiler_params=pltpu.CompilerParams(
            dimension_semantics=("parallel",),
            vmem_limit_bytes=32 * 1024 * 1024,   # ~17 MiB used at tm=8192; OK on v7x's 64 MiB
        ),
    )(xp, w12, b12, w3bd, b3bd)

    return out_p.reshape(b_pad, D_IN)[:B]


def _init_params(key):
    """Deterministic nn.Linear-style init (uniform(-1/sqrt(in), 1/sqrt(in)))."""
    ks = jax.random.split(key, 6)

    def linear(kw, kb, out_f, in_f):
        bound = 1.0 / jnp.sqrt(jnp.float32(in_f))
        w = jax.random.uniform(kw, (out_f, in_f), jnp.float32, -bound, bound)
        b = jax.random.uniform(kb, (out_f,), jnp.float32, -bound, bound)
        return w, b

    w1, b1 = linear(ks[0], ks[1], D_HID, D_IN)   # w1: Linear(32, 64)
    w2, b2 = linear(ks[2], ks[3], D_HID, D_IN)   # w2: Linear(32, 64)
    w3, b3 = linear(ks[4], ks[5], D_IN, D_HID)   # w3: Linear(64, 32)
    return w1, b1, w2, b2, w3, b3


def _reference(x, w1, b1, w2, b2, w3, b3):
    h1 = x @ w1.T + b1
    h2 = x @ w2.T + b2
    silu = h1 * jax.nn.sigmoid(h1)
    return (silu * h2) @ w3.T + b3


if __name__ == "__main__":
    key = jax.random.PRNGKey(0)
    k_x, k_p = jax.random.split(key)
    params = _init_params(k_p)

    def check(batch, seed):
        xin = jax.random.normal(jax.random.PRNGKey(seed), (batch, D_IN), jnp.float32)
        got = jax.block_until_ready(feed_forward(xin, *params))
        want = _reference(xin, *params)
        assert got.shape == (batch, D_IN)
        assert jnp.allclose(got, want, atol=1e-5, rtol=1e-5), f"mismatch vs reference (B={batch})"

    # Primary small check (batch divisible by 4: free reshape, single tile).
    check(8, 0)
    # Batch not a multiple of 4: exercises the wrapper-side pad before packing.
    check(10, 1)
    # Packed rows not a multiple of 8: exercises the masked partial last tile.
    check(20, 2)
    # Larger batch: exercises a multi-step grid (>= 2 steps, partial last tile).
    check(2052, 3)

    print("KERNEL_OK")
</pallas_src>

<mosaic_0001>
module attributes {stable_mosaic.version = 11 : i64} {
  func.func @_ffn_kernel(%arg0: i32, %arg1: memref<8x128xf32, #tpu.memory_space<vmem>>, %arg2: memref<128x512xf32, #tpu.memory_space<vmem>>, %arg3: memref<1x512xf32, #tpu.memory_space<vmem>>, %arg4: memref<256x128xf32, #tpu.memory_space<vmem>>, %arg5: memref<1x128xf32, #tpu.memory_space<vmem>>, %arg6: memref<8x128xf32, #tpu.memory_space<vmem>>) attributes {dimension_semantics = [#tpu.dimension_semantics<parallel>], iteration_bounds = array<i64: 1>, scalar_prefetch = 0 : i64, scratch_operands = 0 : i64, tpu.core_type = #tpu.core_type<tc>, window_params = [{transform_indices = @transform_0, window_bounds = array<i64: 8, 128>}, {pipeline_mode = #tpu.pipeline_mode<synchronous>, transform_indices = @transform_1, window_bounds = array<i64: 128, 512>}, {pipeline_mode = #tpu.pipeline_mode<synchronous>, transform_indices = @transform_2, window_bounds = array<i64: 1, 512>}, {pipeline_mode = #tpu.pipeline_mode<synchronous>, transform_indices = @transform_3, window_bounds = array<i64: 256, 128>}, {pipeline_mode = #tpu.pipeline_mode<synchronous>, transform_indices = @transform_4, window_bounds = array<i64: 1, 128>}, {transform_indices = @transform_5, window_bounds = array<i64: 8, 128>}]} {
    %c0 = arith.constant 0 : index
    %c0_0 = arith.constant 0 : index
    %0 = vector.load %arg1[%c0, %c0_0] : memref<8x128xf32, #tpu.memory_space<vmem>>, vector<8x128xf32>
    %c0_1 = arith.constant 0 : index
    %c0_2 = arith.constant 0 : index
    %1 = vector.load %arg2[%c0_1, %c0_2] : memref<128x512xf32, #tpu.memory_space<vmem>>, vector<128x512xf32>
    %cst = arith.constant dense<0.000000e+00> : vector<8x512xf32>
    %2 = tpu.matmul %0, %1, %cst {dimension_numbers = #tpu.dot_dimension_numbers<[1], [0], [0], [1], [0, 0, 1, 1], [], []>} : vector<8x128xf32>, vector<128x512xf32>, vector<8x512xf32> -> vector<8x512xf32>
    %c0_3 = arith.constant 0 : index
    %c0_4 = arith.constant 0 : index
    %3 = vector.load %arg3[%c0_3, %c0_4] : memref<1x512xf32, #tpu.memory_space<vmem>>, vector<1x512xf32>
    %4 = vector.broadcast %3 : vector<1x512xf32> to vector<8x512xf32>
    %5 = arith.addf %2, %4 : vector<8x512xf32>
    %6 = vector.extract_strided_slice %5 {offsets = [0, 0], sizes = [8, 256], strides = [1, 1]} : vector<8x512xf32> to vector<8x256xf32>
    %7 = vector.extract_strided_slice %5 {offsets = [0, 256], sizes = [8, 256], strides = [1, 1]} : vector<8x512xf32> to vector<8x256xf32>
    %8 = arith.negf %6 : vector<8x256xf32>
    %9 = math.exp %8 : vector<8x256xf32>
    %cst_5 = arith.constant 1.000000e+00 : f32
    %10 = vector.broadcast %cst_5 : f32 to vector<8x256xf32>
    %11 = arith.addf %10, %9 : vector<8x256xf32>
    %12 = arith.divf %10, %11 : vector<8x256xf32>
    %13 = arith.mulf %6, %12 : vector<8x256xf32>
    %14 = arith.mulf %13, %7 : vector<8x256xf32>
    %c0_6 = arith.constant 0 : index
    %c0_7 = arith.constant 0 : index
    %15 = vector.load %arg4[%c0_6, %c0_7] : memref<256x128xf32, #tpu.memory_space<vmem>>, vector<256x128xf32>
    %cst_8 = arith.constant dense<0.000000e+00> : vector<8x128xf32>
    %16 = tpu.matmul %14, %15, %cst_8 {dimension_numbers = #tpu.dot_dimension_numbers<[1], [0], [0], [1], [0, 0, 1, 1], [], []>} : vector<8x256xf32>, vector<256x128xf32>, vector<8x128xf32> -> vector<8x128xf32>
    %c0_9 = arith.constant 0 : index
    %c0_10 = arith.constant 0 : index
    %17 = vector.load %arg5[%c0_9, %c0_10] : memref<1x128xf32, #tpu.memory_space<vmem>>, vector<1x128xf32>
    %18 = vector.broadcast %17 : vector<1x128xf32> to vector<8x128xf32>
    %19 = arith.addf %16, %18 : vector<8x128xf32>
    %c0_11 = arith.constant 0 : index
    %c0_12 = arith.constant 0 : index
    %20 = vector.load %arg6[%c0_11, %c0_12] : memref<8x128xf32, #tpu.memory_space<vmem>>, vector<8x128xf32>
    tpu.vector_store %arg6[%c0_11, %c0_12], %19 {strides = array<i32>} : memref<8x128xf32, #tpu.memory_space<vmem>>, vector<8x128xf32>,
    return
  }
  func.func @transform_0(%arg0: i32) -> (i32, i32) {
    %c0_i32 = arith.constant 0 : i32
    %c0_i32_0 = arith.constant 0 : i32
    return %arg0, %c0_i32 : i32, i32
  }
  func.func @transform_1(%arg0: i32) -> (i32, i32) {
    %c0_i32 = arith.constant 0 : i32
    %c0_i32_0 = arith.constant 0 : i32
    %c0_i32_1 = arith.constant 0 : i32
    return %c0_i32, %c0_i32_0 : i32, i32
  }
  func.func @transform_2(%arg0: i32) -> (i32, i32) {
    %c0_i32 = arith.constant 0 : i32
    %c0_i32_0 = arith.constant 0 : i32
    %c0_i32_1 = arith.constant 0 : i32
    return %c0_i32, %c0_i32_0 : i32, i32
  }
  func.func @transform_3(%arg0: i32) -> (i32, i32) {
    %c0_i32 = arith.constant 0 : i32
    %c0_i32_0 = arith.constant 0 : i32
    %c0_i32_1 = arith.constant 0 : i32
    return %c0_i32, %c0_i32_0 : i32, i32
  }
  func.func @transform_4(%arg0: i32) -> (i32, i32) {
    %c0_i32 = arith.constant 0 : i32
    %c0_i32_0 = arith.constant 0 : i32
    %c0_i32_1 = arith.constant 0 : i32
    return %c0_i32, %c0_i32_0 : i32, i32
  }
  func.func @transform_5(%arg0: i32) -> (i32, i32) {
    %c0_i32 = arith.constant 0 : i32
    %c0_i32_0 = arith.constant 0 : i32
    return %arg0, %c0_i32 : i32, i32
  }
}

</mosaic_0001>

<bundles_post_ra>
// kernel: tpu_custom_call.1
= control target key start
LH: loop header
LB: loop body
LE: loop exit
PB: predicated region body
PF: predicated region fallthrough
CT: control target
= control target key end

     0   :  { %10 = vsyncpa [#allocation3], 0  ;;  %s679_s0 = inlined_call_operand.hbm [shape: f32[2,128], index: 0, kind: input, shape index: {}]   ;;  %s680_s1 = inlined_call_operand.hbm [shape: f32[128,512], index: 1, kind: input, shape index: {}]   ;;  %s681_s2 = inlined_call_operand.hbm [shape: f32[1,512], index: 2, kind: input, shape index: {}]   ;;  %s682_s3 = inlined_call_operand.hbm [shape: f32[256,128], index: 3, kind: input, shape index: {}]   ;;  %s683_s4 = inlined_call_operand.vmem [shape: f32[1,128], index: 4, kind: input, shape index: {}]   ;;  %s684_s5 = inlined_call_operand.hbm [shape: f32[2,128], index: 5, kind: output, shape index: {}]  }
   0x1   :  { %11 = vsyncpa [#allocation6], 0 }
   0x2   :  { %12 = vsyncpa [#allocation9], 0 }
   0x3   :  { %13 = vsyncpa [#allocation4], 0 }
   0x4   :  { %18 = vsyncadd [#allocation3], 96  ;;  %s613_s18 = smov [#allocation5]  }
   0x5   :  { %s31_s19 = sshll.u32 %s613_s18, 4  ;;  %s32_s19 = int_to_ptr.vmem [resolvable:$true] %s31_s19 }
   0x6   :  { %s513_s20 = scalar_lea.vmem %s32_s19, 8192  ;;  %p518_p1 = scmp.lt.s32.totalorder %s32_s19, %s32_s19 }
   0x7   :  { %p514_p0 = scmp.ne.s32.totalorder %s32_s19, %s513_s20  ;;  %p519_p2 = scmp.lt.s32.totalorder %s513_s20, %s513_s20 }
   0x9   :  { %p520_p3 = por %p519_p2, %p518_p1 }
   0xb   :  { %p521_p4 = pnand %p520_p3, %p514_p0 }
   0xd   :  { %524 = shalt.err (!%p521_p4)
}
   0xe   :  { %s614_s21 = smov 512   ;;  %s615_s22 = smov 32  }
   0xf   :  { %37 = dma.hbm_to_vmem [thread:$0]  %s680_s1, 8192, %s32_s19, [#allocation6], %s614_s21, %s614_s21, %s615_s22  }
  0x10   :  { %s616_s25 = smov [#allocation2]  }
  0x11   :  { %s19_s26 = sshll.u32 %s616_s25, 4  ;;  %s20_s26 = int_to_ptr.vmem [resolvable:$true] %s19_s26 }
  0x12   :  { %s533_s27 = scalar_lea.vmem %s20_s26, 32  ;;  %s537_s28 = scalar_lea.vmem %s20_s26, 128 }
  0x13   :  { %p534_p5 = scmp.ne.s32.totalorder %s20_s26, %s533_s27  ;;  %p538_p6 = scmp.lt.s32.totalorder %s20_s26, %s20_s26 }
  0x14   :  { %p539_p7 = scmp.lt.s32.totalorder %s537_s28, %s533_s27 }
  0x16   :  { %p540_p8 = por %p539_p7, %p538_p6 }
  0x18   :  { %p541_p9 = pnand %p540_p8, %p534_p5 }
  0x1a   :  { %544 = shalt.err (!%p541_p9)
}
  0x1b   :  { %s617_s29 = smov 2   ;;  %s618_s1 = smov [#allocation7]  }
  0x1c   :  { %25 = dma.hbm_to_vmem [thread:$0]  %s679_s0, 32, %s20_s26, [#allocation3], %s615_s22, %s615_s22, %s617_s29  }
  0x1d   :  { %s44_s7 = sshll.u32 %s618_s1, 4  ;;  %s619_s8 = smov [#allocation8]   ;;  %s45_s7 = int_to_ptr.vmem [resolvable:$true] %s44_s7 }
  0x1e   :  { %s53_s9 = sshll.u32 %s619_s8, 4  ;;  %s553_s10 = scalar_lea.vmem %s45_s7, 64  ;;  %s54_s9 = int_to_ptr.vmem [resolvable:$true] %s53_s9 }
  0x1f   :  { %p554_p10 = scmp.ne.s32.totalorder %s45_s7, %s553_s10  ;;  %p558_p11 = scmp.lt.s32.totalorder %s45_s7, %s45_s7 }
  0x20   :  { %p559_p12 = scmp.lt.s32.totalorder %s553_s10, %s553_s10 }
  0x22   :  { %p560_p13 = por %p559_p12, %p558_p11 }
  0x24   :  { %p561_p0 = pnand %p560_p13, %p554_p10 }
  0x26   :  { %564 = shalt.err (!%p561_p0)
}
  0x27   :  { %47 = dma.hbm_to_vmem [thread:$0]  %s681_s2, 64, %s45_s7, [#allocation6]  }
  0x28   :  { %s573_s13 = scalar_lea.vmem %s54_s9, 4096  ;;  %p578_p2 = scmp.lt.s32.totalorder %s54_s9, %s54_s9 }
  0x29   :  { %p574_p1 = scmp.ne.s32.totalorder %s54_s9, %s573_s13  ;;  %p579_p3 = scmp.lt.s32.totalorder %s573_s13, %s573_s13 }
  0x2b   :  { %p580_p4 = por %p579_p3, %p578_p2 }
  0x2d   :  { %p581_p5 = pnand %p580_p4, %p574_p1 }
  0x2f   :  { %584 = shalt.err (!%p581_p5)
}
  0x30   :  { %s620_s0 = smov 128   ;;  %s621_s14 = smov 8  }
  0x31   :  { %59 = dma.hbm_to_vmem [thread:$0]  %s682_s3, 4096, %s54_s9, [#allocation9], %s620_s0, %s620_s0, %s621_s14  }
  0x32   :  { %605 = dma.done.wait [#allocation3], 128  }
  0x33   :  { %606 = vsyncadd [#allocation3], 4294967168 }
  0x34   :  { %607 = dma.done.wait [#allocation6], 8256  }
  0x35   :  { %608 = vsyncadd [#allocation6], 4294959040 }
  0x36   :  { %609 = dma.done.wait [#allocation9], 4096  }
  0x37   :  { %610 = vsyncadd [#allocation9], 4294963200  ;;  %v622_v0 = vmov 0.0   ;;  %v136_v1 = vld [vmem:[#allocation5 + $0x1e8] sm:$0xff]  ;;  %v135_v2 = vld [vmem:[#allocation5 + $0x1e0] sm:$0xff] }
  0x38   :  { %225 = vmatprep.mubr.f32.mxu0 %v622_v0  ;;  %296 = vmatprep.mubr.f32.mxu1 %v622_v0  ;;  %v132_v3 = vld [vmem:[#allocation5 + $0x1c8] sm:$0xff]  ;;  %v131_v4 = vld [vmem:[#allocation5 + $0x1c0] sm:$0xff]  ;;  %v138_v15 = vld [vmem:[#allocation5 + $0x1f8] sm:$0xff] }
  0x39   :  { %161 = vmatprep.subr.mxu0 %v136_v1  ;;  %v128_v5 = vld [vmem:[#allocation5 + $0x1a8] sm:$0xff]  ;;  %v127_v6 = vld [vmem:[#allocation5 + $0x1a0] sm:$0xff]  ;;  %v137_v16 = vld [vmem:[#allocation5 + $0x1f0] sm:$0xff]  ;;  %232 = vmatprep.subr.mxu1 %v138_v15 }
  0x3a   :  { %162 = vmatpush1.msra.mxu0 %v135_v2  ;;  %v124_v7 = vld [vmem:[#allocation5 + $0x188] sm:$0xff]  ;;  %v123_v8 = vld [vmem:[#allocation5 + $0x180] sm:$0xff]  ;;  %v134_v17 = vld [vmem:[#allocation5 + $0x1d8] sm:$0xff]  ;;  %233 = vmatpush1.msra.mxu1 %v137_v16 }
  0x3b   :  { %163 = vmatprep.subr.mxu0 %v132_v3  ;;  %v120_v9 = vld [vmem:[#allocation5 + $0x168] sm:$0xff]  ;;  %v119_v10 = vld [vmem:[#allocation5 + $0x160] sm:$0xff]  ;;  %v133_v19 = vld [vmem:[#allocation5 + $0x1d0] sm:$0xff]  ;;  %234 = vmatprep.subr.mxu1 %v134_v17 }
  0x3c   :  { %164 = vmatpush1.msra.mxu0 %v131_v4  ;;  %v116_v11 = vld [vmem:[#allocation5 + $0x148] sm:$0xff]  ;;  %v115_v12 = vld [vmem:[#allocation5 + $0x140] sm:$0xff]  ;;  %v130_v21 = vld [vmem:[#allocation5 + $0x1b8] sm:$0xff]  ;;  %235 = vmatpush1.msra.mxu1 %v133_v19 }
  0x3d   :  { %165 = vmatprep.subr.mxu0 %v128_v5  ;;  %v112_v13 = vld [vmem:[#allocation5 + $0x128] sm:$0xff]  ;;  %v111_v14 = vld [vmem:[#allocation5 + $0x120] sm:$0xff]  ;;  %v129_v23 = vld [vmem:[#allocation5 + $0x1b0] sm:$0xff]  ;;  %236 = vmatprep.subr.mxu1 %v130_v21 }
  0x3e   :  { %166 = vmatpush1.msra.mxu0 %v127_v6  ;;  %v108_v18 = vld [vmem:[#allocation5 + $0x108] sm:$0xff]  ;;  %v107_v20 = vld [vmem:[#allocation5 + $0x100] sm:$0xff]  ;;  %v126_v25 = vld [vmem:[#allocation5 + $0x198] sm:$0xff]  ;;  %237 = vmatpush1.msra.mxu1 %v129_v23 }
  0x3f   :  { %167 = vmatprep.subr.mxu0 %v124_v7  ;;  %v104_v22 = vld [vmem:[#allocation5 + $0xe8] sm:$0xff]  ;;  %v103_v24 = vld [vmem:[#allocation5 + $0xe0] sm:$0xff]  ;;  %v125_v27 = vld [vmem:[#allocation5 + $0x190] sm:$0xff]  ;;  %238 = vmatprep.subr.mxu1 %v126_v25 }
  0x40   :  { %168 = vmatpush1.msra.mxu0 %v123_v8  ;;  %v100_v26 = vld [vmem:[#allocation5 + $0xc8] sm:$0xff]  ;;  %v99_v28 = vld [vmem:[#allocation5 + $0xc0] sm:$0xff]  ;;  %v122_v29 = vld [vmem:[#allocation5 + $0x178] sm:$0xff]  ;;  %239 = vmatpush1.msra.mxu1 %v125_v27 }
  0x41   :  { %169 = vmatprep.subr.mxu0 %v120_v9  ;;  %v96_v30 = vld [vmem:[#allocation5 + $0xa8] sm:$0xff]  ;;  %v121_v31 = vld [vmem:[#allocation5 + $0x170] sm:$0xff]  ;;  %v95_v32 = vld [vmem:[#allocation5 + $0xa0] sm:$0xff]  ;;  %240 = vmatprep.subr.mxu1 %v122_v29 }
  0x42   :  { %170 = vmatpush1.msra.mxu0 %v119_v10  ;;  %v118_v33 = vld [vmem:[#allocation5 + $0x158] sm:$0xff]  ;;  %v92_v34 = vld [vmem:[#allocation5 + $0x88] sm:$0xff]  ;;  %v117_v35 = vld [vmem:[#allocation5 + $0x150] sm:$0xff]  ;;  %241 = vmatpush1.msra.mxu1 %v121_v31 }
  0x43   :  { %171 = vmatprep.subr.mxu0 %v116_v11  ;;  %v91_v36 = vld [vmem:[#allocation5 + $0x80] sm:$0xff]  ;;  %v114_v37 = vld [vmem:[#allocation5 + $0x138] sm:$0xff]  ;;  %v88_v38 = vld [vmem:[#allocation5 + $0x68] sm:$0xff]  ;;  %242 = vmatprep.subr.mxu1 %v118_v33 }
  0x44   :  { %172 = vmatpush1.msra.mxu0 %v115_v12  ;;  %v113_v39 = vld [vmem:[#allocation5 + $0x130] sm:$0xff]  ;;  %v87_v40 = vld [vmem:[#allocation5 + $0x60] sm:$0xff]  ;;  %243 = vmatpush1.msra.mxu1 %v117_v35  ;;  %v110_v41 = vld [vmem:[#allocation5 + $0x118] sm:$0xff] }
  0x45   :  { %173 = vmatprep.subr.mxu0 %v112_v13  ;;  %v84_v42 = vld [vmem:[#allocation5 + $0x48] sm:$0xff]  ;;  %244 = vmatprep.subr.mxu1 %v114_v37  ;;  %v109_v43 = vld [vmem:[#allocation5 + $0x110] sm:$0xff]  ;;  %v83_v44 = vld [vmem:[#allocation5 + $0x40] sm:$0xff] }
  0x46   :  { %174 = vmatpush1.msra.mxu0 %v111_v14  ;;  %245 = vmatpush1.msra.mxu1 %v113_v39  ;;  %v106_v45 = vld [vmem:[#allocation5 + $0xf8] sm:$0xff]  ;;  %v80_v46 = vld [vmem:[#allocation5 + $0x28] sm:$0xff]  ;;  %v105_v47 = vld [vmem:[#allocation5 + $0xf0] sm:$0xff] }
  0x47   :  { %175 = vmatprep.subr.mxu0 %v108_v18  ;;  %246 = vmatprep.subr.mxu1 %v110_v41  ;;  %v79_v48 = vld [vmem:[#allocation5 + $0x20] sm:$0xff]  ;;  %v102_v49 = vld [vmem:[#allocation5 + $0xd8] sm:$0xff]  ;;  %v76_v50 = vld [vmem:[#allocation5 + $0x8] sm:$0xff] }
  0x48   :  { %176 = vmatpush1.msra.mxu0 %v107_v20  ;;  %247 = vmatpush1.msra.mxu1 %v109_v43  ;;  %v101_v51 = vld [vmem:[#allocation5 + $0xd0] sm:$0xff]  ;;  %v75_v52 = vld [vmem:[#allocation5] sm:$0xff]  ;;  %v98_v53 = vld [vmem:[#allocation5 + $0xb8] sm:$0xff] }
  0x49   :  { %177 = vmatprep.subr.mxu0 %v104_v22  ;;  %248 = vmatprep.subr.mxu1 %v106_v45  ;;  %v74_v54 = vld [vmem:[#allocation2] sm:$0xff]  ;;  %v97_v55 = vld [vmem:[#allocation5 + $0xb0] sm:$0xff]  ;;  %v347_v8 = vld [vmem:[#allocation8 + $0xe0] sm:$0xff] }
  0x4a   :  { %178 = vmatpush1.msra.mxu0 %v103_v24  ;;  %249 = vmatpush1.msra.mxu1 %v105_v47  ;;  %v94_v56 = vld [vmem:[#allocation5 + $0x98] sm:$0xff]  ;;  %v93_v57 = vld [vmem:[#allocation5 + $0x90] sm:$0xff]  ;;  %v331_v9 = vld [vmem:[#allocation8 + $0x60] sm:$0xff] }
  0x4b   :  { %179 = vmatprep.subr.mxu0 %v100_v26  ;;  %250 = vmatprep.subr.mxu1 %v102_v49  ;;  %v90_v58 = vld [vmem:[#allocation5 + $0x78] sm:$0xff]  ;;  %v89_v59 = vld [vmem:[#allocation5 + $0x70] sm:$0xff]  ;;  %v343_v16 = vld [vmem:[#allocation8 + $0xc0] sm:$0xff] }
  0x4c   :  { %180 = vmatpush1.msra.mxu0 %v99_v28  ;;  %251 = vmatpush1.msra.mxu1 %v101_v51  ;;  %v86_v60 = vld [vmem:[#allocation5 + $0x58] sm:$0xff]  ;;  %v85_v61 = vld [vmem:[#allocation5 + $0x50] sm:$0xff]  ;;  %v327_v17 = vld [vmem:[#allocation8 + $0x40] sm:$0xff] }
  0x4d   :  { %181 = vmatprep.subr.mxu0 %v96_v30  ;;  %252 = vmatprep.subr.mxu1 %v98_v53  ;;  %v82_v62 = vld [vmem:[#allocation5 + $0x38] sm:$0xff]  ;;  %v81_v63 = vld [vmem:[#allocation5 + $0x30] sm:$0xff]  ;;  %v339_v24 = vld [vmem:[#allocation8 + $0xa0] sm:$0xff] }
  0x4e   :  { %182 = vmatpush1.msra.mxu0 %v95_v32  ;;  %253 = vmatpush1.msra.mxu1 %v97_v55  ;;  %v78_v0 = vld [vmem:[#allocation5 + $0x18] sm:$0xff]  ;;  %v77_v1 = vld [vmem:[#allocation5 + $0x10] sm:$0xff]  ;;  %v323_v25 = vld [vmem:[#allocation8 + $0x20] sm:$0xff] }
  0x4f   :  { %183 = vmatprep.subr.mxu0 %v92_v34  ;;  %254 = vmatprep.subr.mxu1 %v94_v56  ;;  %v350_v2 = vld [vmem:[#allocation8 + $0xf8] sm:$0xff]  ;;  %v349_v4 = vld [vmem:[#allocation8 + $0xf0] sm:$0xff]  ;;  %v348_v6 = vld [vmem:[#allocation8 + $0xe8] sm:$0xff]  ;;  %v141_v34 = vlaneseq }
  0x50   :  { %184 = vmatpush1.msra.mxu0 %v91_v36  ;;  %255 = vmatpush1.msra.mxu1 %v93_v57  ;;  %v334_v3 = vld [vmem:[#allocation8 + $0x78] sm:$0xff]  ;;  %v333_v5 = vld [vmem:[#allocation8 + $0x70] sm:$0xff]  ;;  %v332_v7 = vld [vmem:[#allocation8 + $0x68] sm:$0xff] }
  0x51   :  { %185 = vmatprep.subr.mxu0 %v88_v38  ;;  %256 = vmatprep.subr.mxu1 %v90_v58  ;;  %v346_v10 = vld [vmem:[#allocation8 + $0xd8] sm:$0xff]  ;;  %v345_v12 = vld [vmem:[#allocation8 + $0xd0] sm:$0xff]  ;;  %v344_v14 = vld [vmem:[#allocation8 + $0xc8] sm:$0xff]  ;;  %v142_v35 = vshrl.u32 %v141_v34, 7 }
  0x52   :  { %186 = vmatpush1.msra.mxu0 %v87_v40  ;;  %257 = vmatpush1.msra.mxu1 %v89_v59  ;;  %v330_v11 = vld [vmem:[#allocation8 + $0x58] sm:$0xff]  ;;  %v329_v13 = vld [vmem:[#allocation8 + $0x50] sm:$0xff]  ;;  %v328_v15 = vld [vmem:[#allocation8 + $0x48] sm:$0xff] }
  0x53   :  { %187 = vmatprep.subr.mxu0 %v84_v42  ;;  %258 = vmatprep.subr.mxu1 %v86_v60  ;;  %v342_v18 = vld [vmem:[#allocation8 + $0xb8] sm:$0xff]  ;;  %v341_v20 = vld [vmem:[#allocation8 + $0xb0] sm:$0xff]  ;;  %v340_v22 = vld [vmem:[#allocation8 + $0xa8] sm:$0xff]  ;;  %v143_v36 = vsub.s32 0, %v142_v35  ;;  %v147_v38 = vsub.s32 1, %v142_v35  ;;  %v151_v51 = vsub.s32 2, %v142_v35 }
  0x54   :  { %188 = vmatpush1.msra.mxu0 %v83_v44  ;;  %259 = vmatpush1.msra.mxu1 %v85_v61  ;;  %v326_v19 = vld [vmem:[#allocation8 + $0x38] sm:$0xff]  ;;  %v325_v21 = vld [vmem:[#allocation8 + $0x30] sm:$0xff]  ;;  %v324_v23 = vld [vmem:[#allocation8 + $0x28] sm:$0xff] }
  0x55   :  { %189 = vmatprep.subr.mxu0 %v80_v46  ;;  %260 = vmatprep.subr.mxu1 %v82_v62  ;;  %v338_v26 = vld [vmem:[#allocation8 + $0x98] sm:$0xff]  ;;  %v337_v28 = vld [vmem:[#allocation8 + $0x90] sm:$0xff]  ;;  %v336_v30 = vld [vmem:[#allocation8 + $0x88] sm:$0xff] }
  0x56   :  { %190 = vmatpush1.msra.mxu0 %v79_v48  ;;  %261 = vmatpush1.msra.mxu1 %v81_v63  ;;  %v322_v27 = vld [vmem:[#allocation8 + $0x18] sm:$0xff]  ;;  %v321_v29 = vld [vmem:[#allocation8 + $0x10] sm:$0xff]  ;;  %v320_v31 = vld [vmem:[#allocation8 + $0x8] sm:$0xff] }
  0x57   :  { %191 = vmatprep.subr.mxu0 %v76_v50  ;;  %262 = vmatprep.subr.mxu1 %v78_v0  ;;  %v335_v32 = vld [vmem:[#allocation8 + $0x80] sm:$0xff]  ;;  %v139_v37 = vld [vmem:[#allocation7] sm:$0xf] }
  0x58   :  { %192 = vmatpush1.msra.mxu0 %v75_v52  ;;  %263 = vmatpush1.msra.mxu1 %v77_v1  ;;  %v319_v33 = vld [vmem:[#allocation8] sm:$0xff]  ;;  %v144_v39 = vrot.slane %v139_v37, %v143_v36  ;;  %v148_v40 = vrot.slane %v139_v37, %v147_v38  ;;  %v155_v52 = vsub.s32 3, %v142_v35 }
  0x59   :  { %226 = vmatmul.mubr.f32.vlgmr.msra.gmra.mxu0 %v74_v54  ;;  %297 = vmatmul.mubr.f32.vlgmr.msra.gmra.mxu1 %v74_v54  ;;  %v152_v54 = vrot.slane %v139_v37, %v151_v51 }
  0x5a   :  { %451 = vmatprep.subr.mxu0 %v350_v2  ;;  %v156_v55 = vrot.slane %v139_v37, %v155_v52  ;;  %v450_v2 = vld [vmem:[%s683_s4] ss:$0 sm:$0xff] }
  0x5b   :  { %452 = vmatpush3.msra.mxu0 %v334_v3 }
  0x5c   :  { %453 = vmatprep.subr.mxu0 %v349_v4 }
  0x5d   :  { %454 = vmatpush3.msra.mxu0 %v333_v5 }
  0x5e   :  { %455 = vmatprep.subr.mxu0 %v348_v6 }
  0x5f   :  { %456 = vmatpush3.msra.mxu0 %v332_v7 }
  0x60   :  { %457 = vmatprep.subr.mxu0 %v347_v8 }
  0x61   :  { %458 = vmatpush3.msra.mxu0 %v331_v9 }
  0x62   :  { %459 = vmatprep.subr.mxu0 %v346_v10 }
  0x63   :  { %460 = vmatpush3.msra.mxu0 %v330_v11 }
  0x64   :  { %461 = vmatprep.subr.mxu0 %v345_v12 }
  0x65   :  { %462 = vmatpush3.msra.mxu0 %v329_v13 }
  0x66   :  { %463 = vmatprep.subr.mxu0 %v344_v14 }
  0x67   :  { %464 = vmatpush3.msra.mxu0 %v328_v15 }
  0x68   :  { %465 = vmatprep.subr.mxu0 %v343_v16 }
  0x69   :  { %466 = vmatpush3.msra.mxu0 %v327_v17 }
  0x6a   :  { %467 = vmatprep.subr.mxu0 %v342_v18 }
  0x6b   :  { %468 = vmatpush3.msra.mxu0 %v326_v19 }
  0x6c   :  { %469 = vmatprep.subr.mxu0 %v341_v20 }
  0x6d   :  { %470 = vmatpush3.msra.mxu0 %v325_v21 }
  0x6e   :  { %471 = vmatprep.subr.mxu0 %v340_v22 }
  0x6f   :  { %472 = vmatpush3.msra.mxu0 %v324_v23 }
  0x70   :  { %473 = vmatprep.subr.mxu0 %v339_v24 }
  0x71   :  { %474 = vmatpush3.msra.mxu0 %v323_v25 }
  0x72   :  { %475 = vmatprep.subr.mxu0 %v338_v26 }
  0x73   :  { %476 = vmatpush3.msra.mxu0 %v322_v27 }
  0x74   :  { %477 = vmatprep.subr.mxu0 %v337_v28 }
  0x75   :  { %478 = vmatpush3.msra.mxu0 %v321_v29 }
  0x76   :  { %479 = vmatprep.subr.mxu0 %v336_v30 }
  0x77   :  { %480 = vmatpush3.msra.mxu0 %v320_v31 }
  0x78   :  { %481 = vmatprep.subr.mxu0 %v335_v32 }
  0x79   :  { %482 = vmatpush3.msra.mxu0 %v319_v33 }
 0x119   :  { %v227_v41 = vpop.f32.mrf.mxu0  ;;  %v298_v53 = vpop.f32.mrf.mxu1 }
 0x11a   :  { %v228_v42 = vadd.f32 %v227_v41, %v144_v39  ;;  %v299_v60 = vadd.f32 %v298_v53, %v152_v54 }
 0x11b   :  { %v229_v43 = vpop.f32.mrf.mxu0  ;;  %v300_v57 = vpop.f32.mrf.mxu1 }
 0x11c   :  { %v448_v44 = vmul.f32 -1.442695, %v228_v42  ;;  %v230_v45 = vadd.f32 %v229_v43, %v148_v40  ;;  %v301_v62 = vadd.f32 %v300_v57, %v156_v55 }
 0x11e   :  { %497 = vpow2.f32 %v448_v44  ;;  %v449_v46 = vmul.f32 -1.442695, %v230_v45 }
 0x120   :  { %499 = vpow2.f32 %v449_v46 }
 0x12b   :  { %v498_v47 = vpop.eup %497 }
 0x12c   :  { %v309_v48 = vadd.f32 1.0, %v498_v47 }
 0x12d   :  { %v500_v49 = vpop.eup %499 }
 0x12e   :  { %501 = vrcp.f32 %v309_v48  ;;  %v310_v50 = vadd.f32 1.0, %v500_v49 }
 0x130   :  { %503 = vrcp.f32 %v310_v50 }
 0x13b   :  { %v502_v56 = vpop.eup %501 }
 0x13c   :  { %v315_v59 = vmul.f32 %v502_v56, %v228_v42 }
 0x13d   :  { %v504_v58 = vpop.eup %503 }
 0x13e   :  { %v316_v61 = vmul.f32 %v504_v58, %v230_v45  ;;  %v317_v0 = vmul.f32 %v315_v59, %v299_v60 }
 0x140   :  { %v318_v63 = vmul.f32 %v316_v61, %v301_v62 }
 0x142   :  { %422 = vmatprep.mubr.f32.mxu0 %v318_v63 }
 0x143   :  { %423 = vmatmul.mubr.f32.vlgmr.msra.gmra.mxu0 %v317_v0 }
 0x203   :  { %v483_v1 = vpop.f32.mrf.mxu0 }
 0x205   :  { %v484_v3 = vpop.f32.mrf.mxu0 }
 0x206   :  { %v485_v4 = vadd.f32 %v484_v3, %v483_v1 }
 0x208   :  { %v425_v5 = vadd.f32 %v485_v4, %v450_v2 }
 0x20a   :  { %428 = vst [vmem:[#allocation10] sm:$0xff] %v425_v5 }
 0x20b   :  { %433 = vsyncadd [#allocation4], 96  ;;  %s623_s17 = smov [#allocation10]  }
 0x20c   :  { %s434_s18 = sshll.u32 %s623_s17, 4  ;;  %s435_s18 = int_to_ptr.vmem [resolvable:$true] %s434_s18 }
 0x20d   :  { %s585_s19 = scalar_lea.vmem %s435_s18, 32  ;;  %s589_s20 = scalar_lea.vmem %s435_s18, 128 }
 0x20e   :  { %p586_p6 = scmp.ne.s32.totalorder %s435_s18, %s585_s19  ;;  %p590_p7 = scmp.lt.s32.totalorder %s435_s18, %s435_s18 }
 0x20f   :  { %p591_p8 = scmp.lt.s32.totalorder %s589_s20, %s585_s19 }
 0x211   :  { %p592_p9 = por %p591_p8, %p590_p7 }
 0x213   :  { %p593_p10 = pnand %p592_p9, %p586_p6 }
 0x215   :  { %596 = shalt.err (!%p593_p10)
}
 0x216   :  { %440 = dma.vmem_to_hbm [thread:$0]  %s435_s18, 32, %s684_s5, [#allocation4], %s615_s22, %s615_s22, %s617_s29  }
 0x217   :  { %611 = dma.done.wait [#allocation4], 128  }
 0x218   :  { %612 = vsyncadd [#allocation4], 4294967168 }
 0x219   :  { %444 = vsyncpa [#allocation3], 1 }
 0x21a   :  { %445 = vsyncpa [#allocation6], 1 }
 0x21b   :  { %446 = vsyncpa [#allocation9], 1 }
 0x21c   :  { %447 = vsyncpa [#allocation4], 1 }

</bundles_post_ra>
